<compile_context>
chip_gen: v7x
topology: tpu7x:2x2x1
jax: 0.10.0
libtpu: 0.0.40
codegen_flags: <defaults>
</compile_context>

<pallas_src>
import functools

import jax
import jax.numpy as jnp
from jax.experimental import pallas as pl
from jax.experimental.pallas import tpu as pltpu


BN_EPS = 1e-5


def _round_up(x, m):
    return ((x + m - 1) // m) * m


# ----------------------------------------------------------------------------
# Generation-aware VMEM budgets
# ----------------------------------------------------------------------------
@functools.lru_cache(maxsize=1)
def _vmem_capacity_bytes():
    try:
        cap = int(pltpu.get_tpu_info().vmem_capacity_bytes)
        if cap > 0:
            return cap
    except Exception:
        pass
    return 64 * 1024 * 1024          # conservative fallback (v7x per-TC VMEM)


def _vmem_limit_bytes():
    cap = _vmem_capacity_bytes()
    # ~48 MiB on a 64 MiB part (v7x), ~96 MiB on a 128 MiB part (v5e/v6e).
    return min(int(cap * 0.75), cap - 8 * 1024 * 1024)


def _fused_byte_budget():
    # ~35 MiB on v7x, ~70 MiB on v5e/v6e.
    return int(_vmem_capacity_bytes() * 0.55)


# ----------------------------------------------------------------------------
# Fused whole-MLP kernel: grid = (batch_tiles, layers)
#   - per-layer hidden weight streams in as a (1, D_pad, D_pad) block
#   - running activation lives in VMEM scratch (never touches HBM)
#   - output layer computed on the last layer step under pl.when
# ----------------------------------------------------------------------------
def _fused_mlp_kernel(x_ref, wh_ref, bh_ref, wo_ref, bo_ref, o_ref, h_ref):
    l = pl.program_id(1)

    @pl.when(l == 0)
    def _():
        h_ref[...] = x_ref[...]

    a = h_ref[...].astype(wh_ref.dtype)                       # bf16/f32 feed to MXU
    y = jnp.dot(a, wh_ref[0], preferred_element_type=jnp.float32) + bh_ref[0]
    # Dropout: eval mode -> identity.  BN(eval) is folded into the next layer.
    h_ref[...] = jnp.maximum(y, 0.0)

    @pl.when(l == pl.num_programs(1) - 1)
    def _():
        a2 = h_ref[...].astype(wo_ref.dtype)
        o_ref[...] = (jnp.dot(a2, wo_ref[...], preferred_element_type=jnp.float32)
                      + bo_ref[...]).astype(o_ref.dtype)


def _fused_forward(x_pad, packed, nb, tb):
    B_pad, D_pad = x_pad.shape
    L = packed["wh"].shape[0]
    C_pad = packed["wo"].shape[1]
    return pl.pallas_call(
        _fused_mlp_kernel,
        out_shape=jax.ShapeDtypeStruct((B_pad, C_pad), jnp.float32),
        grid_spec=pltpu.PrefetchScalarGridSpec(
            num_scalar_prefetch=0,
            grid=(nb, L),
            in_specs=[
                pl.BlockSpec((tb, D_pad), lambda b, l: (b, 0)),          # x (per batch tile)
                pl.BlockSpec((1, D_pad, D_pad), lambda b, l: (l, 0, 0)),  # hidden weight, per layer
                pl.BlockSpec((1, 1, D_pad), lambda b, l: (l, 0, 0)),      # hidden bias, per layer
                pl.BlockSpec((D_pad, C_pad), lambda b, l: (0, 0)),        # output weight (resident)
                pl.BlockSpec((1, C_pad), lambda b, l: (0, 0)),            # output bias (resident)
            ],
            out_specs=pl.BlockSpec((tb, C_pad), lambda b, l: (b, 0)),
            scratch_shapes=[pltpu.VMEM((tb, D_pad), jnp.float32)],
        ),
        compiler_params=pltpu.CompilerParams(
            dimension_semantics=("parallel", "arbitrary"),
            vmem_limit_bytes=_vmem_limit_bytes()),
    )(x_pad, packed["wh"], packed["bh"], packed["wo"], packed["bo"])


def _fused_vmem_bytes(tb, D_pad, C_pad, cd_bytes):
    """Estimate of fused-path VMEM use (layer blocks double-buffered only)."""
    wh_blk = D_pad * D_pad * cd_bytes + D_pad * 4      # per-layer weight + bias block
    x_blk = tb * D_pad * 4
    out_blk = tb * C_pad * 4
    wo_b = D_pad * C_pad * cd_bytes + C_pad * 4        # resident output weight/bias
    h_b = tb * D_pad * 4                               # scratch
    return 2 * (wh_blk + x_blk + out_blk) + wo_b + h_b


# ----------------------------------------------------------------------------
# Tiled fallback (large shapes): fused Linear(+bias)(+ReLU) per layer
# ----------------------------------------------------------------------------
def _tiled_layer_kernel(x_ref, w_ref, b_ref, o_ref, acc_ref, *, relu):
    @pl.when(pl.program_id(2) == 0)
    def _():
        acc_ref[...] = jnp.zeros_like(acc_ref)

    a = x_ref[...].astype(w_ref.dtype)
    acc_ref[...] += jnp.dot(a, w_ref[...], preferred_element_type=jnp.float32)

    @pl.when(pl.program_id(2) == pl.num_programs(2) - 1)
    def _():
        y = acc_ref[...] + b_ref[...]
        if relu:
            y = jnp.maximum(y, 0.0)
        o_ref[...] = y.astype(o_ref.dtype)


def _pick_tile(dim, prefs):
    for p in prefs:
        if dim % p == 0:
            return p
    return dim


def _choose_tiles(M, N, K, lhs_bytes, w_bytes, out_bytes):
    limit = int(_vmem_limit_bytes() * 0.9)
    tm = _pick_tile(M, (512, 256, 128, 64, 32, 16, 8))
    tn = _pick_tile(N, (512, 256, 128))
    tk = _pick_tile(K, (1024, 512, 256, 128))

    def est(tm_, tn_, tk_):
        # double-buffered LHS / RHS / bias / output blocks + f32 accumulator
        return (2 * (tm_ * tk_ * lhs_bytes + tk_ * tn_ * w_bytes
                     + tn_ * 4 + tm_ * tn_ * out_bytes)
                + tm_ * tn_ * 4)

    while est(tm, tn, tk) > limit:
        if tk > 128:
            tk //= 2
        elif tn > 128:
            tn //= 2
        elif tm > 8:
            tm //= 2
        else:
            break

    # v7x megacore: make sure the 'parallel' axes have >= 2 tiles when possible
    # so the second TensorCore gets work.
    if (M // tm) * (N // tn) < 2:
        if tn >= 256:
            tn //= 2
        elif tm >= 16:
            tm //= 2
    return tm, tn, tk


def _tiled_linear(x, w, b, *, relu, out_dtype):
    M, K = x.shape
    _, N = w.shape
    tm, tn, tk = _choose_tiles(M, N, K, x.dtype.itemsize, w.dtype.itemsize,
                               jnp.dtype(out_dtype).itemsize)
    grid = (M // tm, N // tn, K // tk)
    kernel = functools.partial(_tiled_layer_kernel, relu=relu)
    return pl.pallas_call(
        kernel,
        out_shape=jax.ShapeDtypeStruct((M, N), out_dtype),
        grid_spec=pltpu.PrefetchScalarGridSpec(
            num_scalar_prefetch=0,
            grid=grid,
            in_specs=[pl.BlockSpec((tm, tk), lambda i, j, k: (i, k)),
                      pl.BlockSpec((tk, tn), lambda i, j, k: (k, j)),
                      pl.BlockSpec((1, tn), lambda i, j, k: (0, j))],
            out_specs=pl.BlockSpec((tm, tn), lambda i, j, k: (i, j)),
            scratch_shapes=[pltpu.VMEM((tm, tn), jnp.float32)]),
        compiler_params=pltpu.CompilerParams(
            dimension_semantics=("parallel", "parallel", "arbitrary"),
            vmem_limit_bytes=_vmem_limit_bytes()),
    )(x, w, b)


# ----------------------------------------------------------------------------
# Parameters (PyTorch layout) + packing (pad / transpose / stack / fold BN)
# ----------------------------------------------------------------------------
def init_mlp_params(key, input_dims, n_hiddens, n_class, use_bn):
    """PyTorch-Linear-style deterministic init; raw (unpadded) layout."""
    if isinstance(n_hiddens, int):
        n_hiddens = [n_hiddens]
    params = {"hidden": [], "use_bn": use_bn, "input_dims": input_dims}
    current = input_dims
    for h in n_hiddens:
        key, kw, kb = jax.random.split(key, 3)
        bound = 1.0 / float(current) ** 0.5
        layer = {
            "w": jax.random.uniform(kw, (h, current), jnp.float32, -bound, bound),
            "b": jax.random.uniform(kb, (h,), jnp.float32, -bound, bound),
        }
        if use_bn:
            key, km, kv = jax.random.split(key, 3)
            layer["gamma"] = jnp.full((h,), 1.1, jnp.float32)
            layer["beta"] = jnp.full((h,), 0.05, jnp.float32)
            layer["mean"] = 0.1 * jax.random.normal(km, (h,), jnp.float32)
            layer["var"] = jnp.abs(jax.random.normal(kv, (h,), jnp.float32)) + 0.5
        params["hidden"].append(layer)
        current = h
    key, kw, kb = jax.random.split(key, 3)
    bound = 1.0 / float(current) ** 0.5
    params["out"] = {
        "w": jax.random.uniform(kw, (n_class, current), jnp.float32, -bound, bound),
        "b": jax.random.uniform(kb, (n_class,), jnp.float32, -bound, bound),
    }
    return params


def prepare_mlp_params(params, compute_dtype=jnp.bfloat16):
    """Pad to 128 lanes, stack hidden layers, fold BN(eval) into the NEXT layer.

    BN follows the ReLU, so  (relu(xW+b)*s + t) @ W' + b'
                          ==  relu(xW+b) @ (diag(s) W') + (t @ W' + b')   exactly.
    """
    hidden = params["hidden"]
    use_bn = params["use_bn"]
    L = len(hidden)
    dims = [params["input_dims"]] + [lay["w"].shape[0] for lay in hidden]
    D_pad = _round_up(max(dims), 128)
    C = params["out"]["w"].shape[0]
    C_pad = _round_up(C, 128)

    # Fold BN of layer l into layer l+1 (or the output layer), unpadded f32.
    folded = []
    prev_s = prev_t = None
    for lay in hidden:
        W = lay["w"].T                         # (in, out)
        b = lay["b"]
        if prev_s is not None:
            b = b + prev_t @ W                 # uses ORIGINAL W
            W = prev_s[:, None] * W
        folded.append((W, b))
        if use_bn:
            prev_s = lay["gamma"] * jax.lax.rsqrt(lay["var"] + BN_EPS)
            prev_t = lay["beta"] - lay["mean"] * prev_s
        else:
            prev_s = prev_t = None

    Wo = params["out"]["w"].T                  # (in, n_class)
    bo = params["out"]["b"]
    if prev_s is not None:
        bo = bo + prev_t @ Wo
        Wo = prev_s[:, None] * Wo

    wh = jnp.zeros((L, D_pad, D_pad), jnp.float32)
    bh = jnp.zeros((L, 1, D_pad), jnp.float32)
    for l, (W, b) in enumerate(folded):
        cin, cout = W.shape
        wh = wh.at[l, :cin, :cout].set(W)
        bh = bh.at[l, 0, :cout].set(b)

    wo = jnp.zeros((D_pad, C_pad), jnp.float32).at[:Wo.shape[0], :C].set(Wo)
    bo_p = jnp.zeros((1, C_pad), jnp.float32).at[0, :C].set(bo)

    return {
        "wh": wh.astype(compute_dtype),
        "bh": bh,
        "wo": wo.astype(compute_dtype),
        "bo": bo_p,
    }


# ----------------------------------------------------------------------------
# Forward
# ----------------------------------------------------------------------------
@functools.partial(jax.jit, static_argnames=("n_class", "force_tiled"))
def mlp_forward(x, packed, n_class, force_tiled=False):
    B, Din = x.shape
    L, D_pad, _ = packed["wh"].shape
    C_pad = packed["wo"].shape[1]
    cd_bytes = packed["wh"].dtype.itemsize

    # Fused-path batch tiling: pad batch to a multiple of 8 (f32 sublane) and,
    # when it is big enough, split into 2 row tiles so v7x megacore can shard.
    B_pad = _round_up(B, 8)
    nb = 2 if (B_pad >= 16 and B_pad % 16 == 0) else 1
    tb = B_pad // nb

    use_fused = (not force_tiled) and (
        _fused_vmem_bytes(tb, D_pad, C_pad, cd_bytes) <= _fused_byte_budget())

    if use_fused:
        x_pad = jnp.zeros((B_pad, D_pad), jnp.float32).at[:B, :Din].set(x)
        out_pad = _fused_forward(x_pad, packed, nb, tb)
    else:
        B_pad = _round_up(B, 128)
        act_dtype = packed["wh"].dtype      # bf16 inter-layer activations if bf16 weights
        h = jnp.zeros((B_pad, D_pad), jnp.float32).at[:B, :Din].set(x)
        for l in range(L):
            h = _tiled_linear(h, packed["wh"][l], packed["bh"][l],
                              relu=True, out_dtype=act_dtype)
        out_pad = _tiled_linear(h, packed["wo"], packed["bo"],
                                relu=False, out_dtype=jnp.float32)
    return out_pad[:B, :n_class]


def mlp_reference(x, params):
    """Pure-JAX reference (eval mode) for correctness check."""
    use_bn = params["use_bn"]
    h = x
    for lay in params["hidden"]:
        h = jnp.maximum(h @ lay["w"].T + lay["b"], 0.0)
        if use_bn:
            h = (h - lay["mean"]) * jax.lax.rsqrt(lay["var"] + BN_EPS) \
                * lay["gamma"] + lay["beta"]
    return h @ params["out"]["w"].T + params["out"]["b"]


if __name__ == "__main__":
    key = jax.random.PRNGKey(0)
    batch, input_dims, n_hiddens, n_class = 8, 32, [32, 32], 8
    dropout, use_bn = 0.5, True      # dropout is identity in eval mode

    key, kx, kp = jax.random.split(key, 3)
    x = jax.random.normal(kx, (batch, input_dims), jnp.float32)
    params = init_mlp_params(kp, input_dims, n_hiddens, n_class, use_bn)
    ref = mlp_reference(x, params)

    # --- f32 weights: tight tolerance, exercise fused + tiled paths ---------
    packed_f32 = prepare_mlp_params(params, compute_dtype=jnp.float32)

    out = jax.block_until_ready(mlp_forward(x, packed_f32, n_class=n_class))
    assert out.shape == (batch, n_class), out.shape
    assert jnp.allclose(out, ref, atol=1e-4, rtol=1e-4), \
        float(jnp.max(jnp.abs(out - ref)))

    out_t = jax.block_until_ready(
        mlp_forward(x, packed_f32, n_class=n_class, force_tiled=True))
    assert jnp.allclose(out_t, ref, atol=1e-4, rtol=1e-4), \
        float(jnp.max(jnp.abs(out_t - ref)))

    # --- bf16 weights (default / recommended): looser tolerance -------------
    packed_bf16 = prepare_mlp_params(params, compute_dtype=jnp.bfloat16)

    out_b = jax.block_until_ready(mlp_forward(x, packed_bf16, n_class=n_class))
    assert jnp.allclose(out_b, ref, atol=1e-1, rtol=1e-1), \
        float(jnp.max(jnp.abs(out_b - ref)))

    out_bt = jax.block_until_ready(
        mlp_forward(x, packed_bf16, n_class=n_class, force_tiled=True))
    assert jnp.allclose(out_bt, ref, atol=1e-1, rtol=1e-1), \
        float(jnp.max(jnp.abs(out_bt - ref)))

    print("KERNEL_OK")
</pallas_src>

<mosaic_0001>
module attributes {stable_mosaic.version = 11 : i64} {
  func.func @_fused_mlp_kernel(%arg0: i32, %arg1: i32, %arg2: memref<8x128xf32, #tpu.memory_space<vmem>>, %arg3: memref<1x128x128xf32, #tpu.memory_space<vmem>>, %arg4: memref<1x1x128xf32, #tpu.memory_space<vmem>>, %arg5: memref<128x128xf32, #tpu.memory_space<vmem>>, %arg6: memref<1x128xf32, #tpu.memory_space<vmem>>, %arg7: memref<8x128xf32, #tpu.memory_space<vmem>>, %arg8: memref<8x128xf32, #tpu.memory_space<vmem>>) attributes {dimension_semantics = [#tpu.dimension_semantics<parallel>, #tpu.dimension_semantics<arbitrary>], iteration_bounds = array<i64: 1, 2>, scalar_prefetch = 0 : i64, scratch_operands = 1 : i64, tpu.core_type = #tpu.core_type<tc>, window_params = [{transform_indices = @transform_0, window_bounds = array<i64: 8, 128>}, {transform_indices = @transform_1, window_bounds = array<i64: 1, 128, 128>}, {transform_indices = @transform_2, window_bounds = array<i64: 1, 1, 128>}, {pipeline_mode = #tpu.pipeline_mode<synchronous>, transform_indices = @transform_3, window_bounds = array<i64: 128, 128>}, {pipeline_mode = #tpu.pipeline_mode<synchronous>, transform_indices = @transform_4, window_bounds = array<i64: 1, 128>}, {transform_indices = @transform_5, window_bounds = array<i64: 8, 128>}]} {
    %c0_i32 = arith.constant 0 : i32
    %0 = arith.cmpi eq, %arg1, %c0_i32 : i32
    %1 = arith.extui %0 : i1 to i32
    %c0_i32_0 = arith.constant 0 : i32
    %2 = arith.cmpi ne, %1, %c0_i32_0 : i32
    scf.if %2 {
      %c0_12 = arith.constant 0 : index
      %c0_13 = arith.constant 0 : index
      %17 = vector.load %arg2[%c0_12, %c0_13] : memref<8x128xf32, #tpu.memory_space<vmem>>, vector<8x128xf32>
      %c0_14 = arith.constant 0 : index
      %c0_15 = arith.constant 0 : index
      %18 = vector.load %arg8[%c0_14, %c0_15] : memref<8x128xf32, #tpu.memory_space<vmem>>, vector<8x128xf32>
      tpu.vector_store %arg8[%c0_14, %c0_15], %17 {strides = array<i32>} : memref<8x128xf32, #tpu.memory_space<vmem>>, vector<8x128xf32>,
    } else {
    }
    %c0 = arith.constant 0 : index
    %c0_1 = arith.constant 0 : index
    %3 = vector.load %arg8[%c0, %c0_1] : memref<8x128xf32, #tpu.memory_space<vmem>>, vector<8x128xf32>
    %c0_2 = arith.constant 0 : index
    %c0_3 = arith.constant 0 : index
    %c0_4 = arith.constant 0 : index
    %4 = vector.load %arg3[%c0_2, %c0_3, %c0_4] : memref<1x128x128xf32, #tpu.memory_space<vmem>>, vector<1x128x128xf32>
    %5 = vector.shape_cast %4 : vector<1x128x128xf32> to vector<128x128xf32>
    %cst = arith.constant dense<0.000000e+00> : vector<8x128xf32>
    %6 = tpu.matmul %3, %5, %cst {dimension_numbers = #tpu.dot_dimension_numbers<[1], [0], [0], [1], [0, 0, 1, 1], [], []>} : vector<8x128xf32>, vector<128x128xf32>, vector<8x128xf32> -> vector<8x128xf32>
    %c0_5 = arith.constant 0 : index
    %c0_6 = arith.constant 0 : index
    %c0_7 = arith.constant 0 : index
    %7 = vector.load %arg4[%c0_5, %c0_6, %c0_7] : memref<1x1x128xf32, #tpu.memory_space<vmem>>, vector<1x1x128xf32>
    %8 = vector.shape_cast %7 : vector<1x1x128xf32> to vector<1x128xf32>
    %9 = vector.broadcast %8 : vector<1x128xf32> to vector<8x128xf32>
    %10 = arith.addf %6, %9 : vector<8x128xf32>
    %cst_8 = arith.constant 0.000000e+00 : f32
    %11 = vector.broadcast %cst_8 : f32 to vector<8x128xf32>
    %12 = arith.maximumf %10, %11 : vector<8x128xf32>
    %c0_9 = arith.constant 0 : index
    %c0_10 = arith.constant 0 : index
    %13 = vector.load %arg8[%c0_9, %c0_10] : memref<8x128xf32, #tpu.memory_space<vmem>>, vector<8x128xf32>
    tpu.vector_store %arg8[%c0_9, %c0_10], %12 {strides = array<i32>} : memref<8x128xf32, #tpu.memory_space<vmem>>, vector<8x128xf32>,
    %c1_i32 = arith.constant 1 : i32
    %14 = arith.cmpi eq, %arg1, %c1_i32 : i32
    %15 = arith.extui %14 : i1 to i32
    %c0_i32_11 = arith.constant 0 : i32
    %16 = arith.cmpi ne, %15, %c0_i32_11 : i32
    scf.if %16 {
      %c0_12 = arith.constant 0 : index
      %c0_13 = arith.constant 0 : index
      %17 = vector.load %arg8[%c0_12, %c0_13] : memref<8x128xf32, #tpu.memory_space<vmem>>, vector<8x128xf32>
      %c0_14 = arith.constant 0 : index
      %c0_15 = arith.constant 0 : index
      %18 = vector.load %arg5[%c0_14, %c0_15] : memref<128x128xf32, #tpu.memory_space<vmem>>, vector<128x128xf32>
      %cst_16 = arith.constant dense<0.000000e+00> : vector<8x128xf32>
      %19 = tpu.matmul %17, %18, %cst_16 {dimension_numbers = #tpu.dot_dimension_numbers<[1], [0], [0], [1], [0, 0, 1, 1], [], []>} : vector<8x128xf32>, vector<128x128xf32>, vector<8x128xf32> -> vector<8x128xf32>
      %c0_17 = arith.constant 0 : index
      %c0_18 = arith.constant 0 : index
      %20 = vector.load %arg6[%c0_17, %c0_18] : memref<1x128xf32, #tpu.memory_space<vmem>>, vector<1x128xf32>
      %21 = vector.broadcast %20 : vector<1x128xf32> to vector<8x128xf32>
      %22 = arith.addf %19, %21 : vector<8x128xf32>
      %c0_19 = arith.constant 0 : index
      %c0_20 = arith.constant 0 : index
      %23 = vector.load %arg7[%c0_19, %c0_20] : memref<8x128xf32, #tpu.memory_space<vmem>>, vector<8x128xf32>
      tpu.vector_store %arg7[%c0_19, %c0_20], %22 {strides = array<i32>} : memref<8x128xf32, #tpu.memory_space<vmem>>, vector<8x128xf32>,
    } else {
    }
    return
  }
  func.func @transform_0(%arg0: i32, %arg1: i32) -> (i32, i32) {
    %c0_i32 = arith.constant 0 : i32
    %c0_i32_0 = arith.constant 0 : i32
    return %arg0, %c0_i32 : i32, i32
  }
  func.func @transform_1(%arg0: i32, %arg1: i32) -> (i32, i32, i32) {
    %c0_i32 = arith.constant 0 : i32
    %c0_i32_0 = arith.constant 0 : i32
    %c0_i32_1 = arith.constant 0 : i32
    return %arg1, %c0_i32, %c0_i32_0 : i32, i32, i32
  }
  func.func @transform_2(%arg0: i32, %arg1: i32) -> (i32, i32, i32) {
    %c0_i32 = arith.constant 0 : i32
    %c0_i32_0 = arith.constant 0 : i32
    %c0_i32_1 = arith.constant 0 : i32
    return %arg1, %c0_i32, %c0_i32_0 : i32, i32, i32
  }
  func.func @transform_3(%arg0: i32, %arg1: i32) -> (i32, i32) {
    %c0_i32 = arith.constant 0 : i32
    %c0_i32_0 = arith.constant 0 : i32
    %c0_i32_1 = arith.constant 0 : i32
    return %c0_i32, %c0_i32_0 : i32, i32
  }
  func.func @transform_4(%arg0: i32, %arg1: i32) -> (i32, i32) {
    %c0_i32 = arith.constant 0 : i32
    %c0_i32_0 = arith.constant 0 : i32
    %c0_i32_1 = arith.constant 0 : i32
    return %c0_i32, %c0_i32_0 : i32, i32
  }
  func.func @transform_5(%arg0: i32, %arg1: i32) -> (i32, i32) {
    %c0_i32 = arith.constant 0 : i32
    %c0_i32_0 = arith.constant 0 : i32
    return %arg0, %c0_i32 : i32, i32
  }
}

</mosaic_0001>

<bundles_post_ra>
// kernel: mlp_forward.1
= control target key start
LH: loop header
LB: loop body
LE: loop exit
PB: predicated region body
PF: predicated region fallthrough
CT: control target
= control target key end

     0   :  { %10 = vsyncpa [#allocation4], 0  ;;  %s1265_s0 = inlined_call_operand.vmem [shape: f32[8,128], index: 0, kind: input, shape index: {}]   ;;  %s1266_s1 = inlined_call_operand.hbm [shape: f32[2,128,128], index: 1, kind: input, shape index: {}]   ;;  %s1267_s2 = inlined_call_operand.vmem [shape: f32[2,1,128], index: 2, kind: input, shape index: {}]   ;;  %s1268_s3 = inlined_call_operand.hbm [shape: f32[128,128], index: 3, kind: input, shape index: {}]   ;;  %s1269_s4 = inlined_call_operand.vmem [shape: f32[1,128], index: 4, kind: input, shape index: {}]   ;;  %s1270_s5 = inlined_call_operand.hbm [shape: f32[8,128], index: 5, kind: output, shape index: {}]  }
   0x1   :  { %12 = vsyncpa [#allocation4 + $0x1], 0 }
   0x2   :  { %13 = vsyncpa [#allocation7], 0 }
   0x3   :  { %14 = vsyncpa [#allocation5], 0  ;;  %s1037_s18 = smov 0   ;;  %s1039_s19 = smov 0  }
   0x4   :  { %s1041_s20 = smov 0   ;;  %s1043_s21 = smov 0  }
   0x5   :  { %s1045_s22 = smov 0   ;;  %s1047_s23 = smov 0  }
   0x6 LB: > { %s599_s24 = sadd.s32 4294967295, %s994_s23   ;;  %p78_p0 = scmp.ne.s32.totalorder %s978_s19, %s974_s18  ;;  %s994_s23 = sphi %s1047_s23, %s20_s23   ;;  %s990_s22 = sphi %s1045_s22, %s1288_s22   ;;  %s986_s21 = sphi %s1043_s21, %s1287_s21   ;;  %s982_s20 = sphi %s1041_s20, %s1286_s20   ;;  %s978_s19 = sphi %s1039_s19, %s1285_s19   ;;  %s974_s18 = sphi %s1037_s18, %s1284_s18  }
   0x7   : > { %p1069_p1 = scmp.eq.s32.totalorder %s599_s24, 0  ;;  %p600_p2 = scmp.ge.s32.totalorder %s994_s23, 1 }
   0x8   : > { %p183_p3 = scmp.lt.s32.totalorder %s994_s23, 3  ;;  %s996_s28 = smov [#allocation6]  }
   0x9   : > { %s1275_s25 = scalar_select %p1069_p1, 1, 0 }
   0xa   : > { %p1077_p4 = por %p1069_p1, %p78_p0  ;;  %p1081_p5 = pnand %p600_p2, %p183_p3 }
   0xb   : > { %s202_s29 = sshll.u32 %s996_s28, 4  ;;  %s29_s6 = sadd.s32 1, %s990_s22  ;;  %s203_s29 = int_to_ptr.vmem [resolvable:$true] %s202_s29 }
   0xc   : > { %s1276_s26 = scalar_select %p1077_p4, 1, 0 }
   0xd   : > { %s1277_s27 = scalar_select %p1081_p5, 1, 0 }
   0xe   : > { %p781_p6 = pneg %p1081_p5  ;;  %s852_s9 = scalar_lea.hbm %s1268_s3, 2048 }
   0xf   : > { %p853_p8 = scmp.ne.s32.totalorder %s1268_s3, %s852_s9  ;;  %p859_p12 = scmp.lt.u32.totalorder %s852_s9, %s1268_s3 }
  0x10   : > { %p1089_p7 = pnand %p781_p6, %p1069_p1 }
  0x12   : > { %p854_p9 = pneg %p1089_p7 }
  0x14   : > { %p855_p10 = pnand %p854_p9, %p853_p8 }
  0x16   : > { %p856_p11 = pneg %p855_p10 }
  0x18   : > { %p861_p13 = pnand %p859_p12, %p856_p11 }
  0x1a   : > { %864 = shalt.err (!%p861_p13)
}
  0x1b   : > { %s865_s14 = scalar_lea.vmem %s203_s29, 2048  ;;  %p873_p6 = scmp.lt.s32.totalorder %s203_s29, %s203_s29 }
  0x1c   : > { %p866_p0 = scmp.ne.s32.totalorder %s203_s29, %s865_s14  ;;  %p874_p1 = scmp.lt.s32.totalorder %s865_s14, %s865_s14 }
  0x1e   : > { %p868_p2 = pnand %p866_p0, %p854_p9  ;;  %p875_p4 = por %p874_p1, %p873_p6 }
  0x20   : > { %p869_p3 = pneg %p868_p2 }
  0x22   : > { %p876_p5 = pnand %p875_p4, %p869_p3 }
  0x24   : > { %879 = shalt.err (!%p876_p5)
}
  0x25   : > { %s997_s15 = smov 128   ;;  %s998_s16 = smov 8  }
  0x26   : > { %784 = dma.hbm_to_vmem [thread:$0]  (!%p1089_p7), %s1268_s3, 2048, %s203_s29, [#allocation7], %s997_s15, %s997_s15, %s998_s16  }
  0x27   : > { %p30_p1 = scmp.ge.s32.totalorder %s29_s6, 2  ;;  %s65_s28 = sadd.s32 1, %s982_s20 }
  0x28   : > { %p72_p4 = scmp.ne.s32.totalorder %s982_s20, %s978_s19  ;;  %p73_p5 = scmp.eq.s32.totalorder %s994_s23, 0 }
  0x29   : > { %s1290_s6 = smov (%p30_p1, %s29_s6), 0  ;;  %p790_p9 = scmp.lt.s32.totalorder %s994_s23, 2 }
  0x2a   : > { %p74_p8 = por %p73_p5, %p72_p4  ;;  %s62_s7 = ssub.s32 %s990_s22, %s1290_s6 }
  0x2b   : > { %s219_s8 = sand.u32 1, %s982_s20   ;;  %p63_p10 = scmp.eq.s32.totalorder %s62_s7, 0 }
  0x2c   : > { %s604_s30 = sshll.u32 %s219_s8, 7  ;;  %s618_s9 = sshll.u32 %s990_s22, 11 }
  0x2d   : > { %s1125_s10 = scalar_select %p63_p10, %s982_s20, %s65_s28  }
  0x2e   : > { %s1130_s29 = scalar_lea.hbm %s1266_s1, %s618_s9  ;;  %s223_s13 = scalar_lea.vmem [#allocation3], %s604_s30 }
  0x2f   : > { %s230_s14 = sshll.u32 %s223_s13, 4  ;;  %p1132_p7 = pnand %p790_p9, %p74_p8  ;;  %s1136_s14 = int_to_ptr.vmem [resolvable:$true] %s230_s14 }
  0x30   : > { %s1138_s18 = scalar_lea.sflag [#allocation4], %s219_s8  ;;  %s880_s28 = scalar_lea.hbm %s1130_s29, 2048 }
  0x31   : > { %p881_p11 = scmp.ne.s32.totalorder %s1130_s29, %s880_s28  ;;  %p882_p12 = pneg %p1132_p7 }
  0x32   : > { %s885_s9 = scalar_lea.hbm %s1266_s1, 4096  ;;  %p886_p2 = scmp.lt.u32.totalorder %s1130_s29, %s1266_s1 }
  0x33   : > { %p883_p13 = pnand %p882_p12, %p881_p11  ;;  %p887_p3 = scmp.lt.u32.totalorder %s885_s9, %s880_s28 }
  0x34   : > { %p889_p1 = scmp.lt.u32.totalorder %s880_s28, %s1130_s29 }
  0x35   : > { %p884_p0 = pneg %p883_p13  ;;  %p888_p6 = por %p887_p3, %p886_p2 }
  0x37   : > { %p890_p4 = por %p889_p1, %p888_p6 }
  0x39   : > { %p891_p5 = pnand %p890_p4, %p884_p0 }
  0x3b   : > { %894 = shalt.err (!%p891_p5)
}
  0x3c   : > { %s895_s8 = scalar_lea.vmem %s1136_s14, 2048  ;;  %s999_s13 = smov [#allocation3]  }
  0x3d   : > { %p896_p8 = scmp.ne.s32.totalorder %s1136_s14, %s895_s8  ;;  %s900_s7 = sshll.u32 %s999_s13, 4  ;;  %s901_s7 = int_to_ptr.vmem [resolvable:$false] %s900_s7 }
  0x3e   : > { %s902_s30 = scalar_lea.vmem %s901_s7, 4096  ;;  %p903_p11 = scmp.lt.s32.totalorder %s1136_s14, %s901_s7 }
  0x3f   : > { %p898_p9 = pnand %p896_p8, %p882_p12  ;;  %p904_p13 = scmp.lt.s32.totalorder %s902_s30, %s895_s8 }
  0x41   : > { %p899_p10 = pneg %p898_p9  ;;  %p905_p2 = por %p904_p13, %p903_p11 }
  0x43   : > { %p906_p3 = pnand %p905_p2, %p899_p10 }
  0x45   : > { %909 = shalt.err (!%p906_p3)
}
  0x46   : > { %788 = dma.hbm_to_vmem [thread:$0]  (!%p1132_p7), %s1130_s29, 2048, %s1136_s14, %s1138_s18, %s997_s15, %s997_s15, %s998_s16  }
  0x47   : > { %p1280_p12 = scmp.ne.s32.totalorder %s1277_s27, 0 }
  0x48   : > { %s250_s28 = sand.u32 (!%p1280_p12), 1, %s978_s19   ;;  %p1281_p0 = scmp.ne.s32.totalorder (!%p1280_p12), %s1276_s26, 0 }
  0x49   : > { %248 = sbr.rel (%p1280_p12) target bundleno = 592 (0x250), region = 40  ;;  %s608_s9 = sshll.u32 (!%p1280_p12), %s250_s28, 7 }
  0x4a   : > { %s251_s11 = scalar_lea.sflag (!%p1280_p12), [#allocation4], %s250_s28  ;;  %s1172_s12 = scalar_lea.vmem (!%p1280_p12), [#allocation3], %s608_s9 }
  0x50   : > { %961 = dma.done.wait (%p1281_p0), %s251_s11, 2048  }
  0x51   : > { %963 = vsyncadd (%p1281_p0), %s251_s11, 4294965248  ;;  %p1282_p6 = scmp.ne.s32.totalorder %s1275_s25, 0 }
  0x53   : > { %965 = dma.done.wait (%p1282_p6), [#allocation7], 2048  }
  0x54   : > { %967 = vsyncadd (%p1282_p6), [#allocation7], 4294965248  ;;  %p291_p7 = scmp.lt.s32.totalorder %s986_s21, 1  ;;  %p610_p1 = scmp.ne.s32.totalorder %s986_s21, 0 }
  0x55   : > { %v298_v0 = vld [vmem:[%s1265_s0] sm:$0xff] (!%p610_p1) }
  0x56   : > { %s1184_s27 = scalar_select %p291_p7, %s986_s21, 1 }
  0x57   : > { %297 = sbr.rel (%p610_p1) target bundleno = 94 (0x5e), region = 52  ;;  %299 = vst [vmem:[#allocation2] sm:$0xff] (!%p610_p1), %v298_v0 }
  0x58   : > { %s293_s29 = scalar_lea.vmem %s1267_s2, %s1184_s27 }
  0x5e PF: > { %v301_v1 = vld [vmem:[%s1172_s12] sm:$0xff]  ;;  %v302_v2 = vld [vmem:[%s1172_s12 + $0x8] sm:$0xff]  ;;  %v303_v3 = vld [vmem:[%s1172_s12 + $0x10] sm:$0xff]  ;;  %v1000_v4 = vmov 0.0|0.0   ;;  %vm1001_vm0 = vmmov 0   ;;  %v1002_v7 = vmov 0.0  }
  0x5f   : > { %723 = vmatprep.subr.bf16.mxu0 %v1000_v4  ;;  %v724_v5 = vpack.c.bf16 %v302_v2, %v301_v1  ;;  %v304_v6 = vld [vmem:[%s1172_s12 + $0x18] sm:$0xff]  ;;  %685 = vmatprep.mubr.msk.f32.mxu0 %vm1001_vm0, %v1002_v7  ;;  %v305_v9 = vld [vmem:[%s1172_s12 + $0x20] sm:$0xff]  ;;  %v306_v10 = vld [vmem:[%s1172_s12 + $0x28] sm:$0xff]  ;;  %p612_p4 = scmp.ne.s32.totalorder %s986_s21, 1 }
  0x60   : > { %v727_v8 = vpack.c.bf16 %v304_v6, %v303_v3  ;;  %v730_v11 = vpack.c.bf16 %v306_v10, %v305_v9  ;;  %v307_v12 = vld [vmem:[%s1172_s12 + $0x30] sm:$0xff]  ;;  %v308_v13 = vld [vmem:[%s1172_s12 + $0x38] sm:$0xff]  ;;  %v309_v15 = vld [vmem:[%s1172_s12 + $0x40] sm:$0xff]  ;;  %v1003_v36 = vmov (!%p612_p4), 0.0|0.0   ;;  %vm1004_vm1 = vmmov (!%p612_p4), 0  }
  0x61   : > { %725 = vmatpush3.bf16.msra.mxu0 %v724_v5  ;;  %v733_v14 = vpack.c.bf16 %v308_v13, %v307_v12  ;;  %v310_v16 = vld [vmem:[%s1172_s12 + $0x48] sm:$0xff]  ;;  %v311_v18 = vld [vmem:[%s1172_s12 + $0x50] sm:$0xff]  ;;  %v312_v19 = vld [vmem:[%s1172_s12 + $0x58] sm:$0xff]  ;;  %v1005_v39 = vmov (!%p612_p4), 0.0  }
  0x62   : > { %726 = vmatprep.subr.bf16.mxu0 %v1000_v4  ;;  %v736_v17 = vpack.c.bf16 %v310_v16, %v309_v15  ;;  %v739_v20 = vpack.c.bf16 %v312_v19, %v311_v18  ;;  %v313_v21 = vld [vmem:[%s1172_s12 + $0x60] sm:$0xff]  ;;  %v314_v22 = vld [vmem:[%s1172_s12 + $0x68] sm:$0xff]  ;;  %v315_v24 = vld [vmem:[%s1172_s12 + $0x70] sm:$0xff] }
  0x63   : > { %v742_v23 = vpack.c.bf16 %v314_v22, %v313_v21  ;;  %v316_v25 = vld [vmem:[%s1172_s12 + $0x78] sm:$0xff]  ;;  %v401_v33 = vld [vmem:[#allocation6] sm:$0xff] (!%p612_p4)  ;;  %v402_v34 = vld [vmem:[#allocation6 + $0x8] sm:$0xff] (!%p612_p4) }
  0x64   : > { %v745_v26 = vpack.c.bf16 %v316_v25, %v315_v24  ;;  %v300_v27 = vld [vmem:[#allocation2] sm:$0xff]  ;;  %v403_v35 = vld [vmem:[#allocation6 + $0x10] sm:$0xff] (!%p612_p4)  ;;  %v748_v37 = vpack.c.bf16 (!%p612_p4), %v402_v34, %v401_v33  ;;  %v405_v41 = vld [vmem:[#allocation6 + $0x20] sm:$0xff] (!%p612_p4) }
  0x65   : > { %728 = vmatpush3.bf16.msra.mxu0 %v727_v8  ;;  %v611_v28 = vld [vmem:[%s293_s29] ss:$0 sm:$0xff]  ;;  %v406_v42 = vld [vmem:[#allocation6 + $0x28] sm:$0xff] (!%p612_p4)  ;;  %v407_v44 = vld [vmem:[#allocation6 + $0x30] sm:$0xff] (!%p612_p4) }
  0x66   : > { %729 = vmatprep.subr.bf16.mxu0 %v1000_v4  ;;  %v404_v38 = vld [vmem:[#allocation6 + $0x18] sm:$0xff] (!%p612_p4)  ;;  %v754_v43 = vpack.c.bf16 (!%p612_p4), %v406_v42, %v405_v41  ;;  %v409_v47 = vld [vmem:[#allocation6 + $0x40] sm:$0xff] (!%p612_p4)  ;;  %v410_v48 = vld [vmem:[#allocation6 + $0x48] sm:$0xff] (!%p612_p4) }
  0x67   : > { %v751_v40 = vpack.c.bf16 (!%p612_p4), %v404_v38, %v403_v35  ;;  %v408_v45 = vld [vmem:[#allocation6 + $0x38] sm:$0xff] (!%p612_p4)  ;;  %v760_v49 = vpack.c.bf16 (!%p612_p4), %v410_v48, %v409_v47  ;;  %v411_v50 = vld [vmem:[#allocation6 + $0x50] sm:$0xff] (!%p612_p4)  ;;  %v413_v53 = vld [vmem:[#allocation6 + $0x60] sm:$0xff] (!%p612_p4) }
  0x68   : > { %v757_v46 = vpack.c.bf16 (!%p612_p4), %v408_v45, %v407_v44  ;;  %v412_v51 = vld [vmem:[#allocation6 + $0x58] sm:$0xff] (!%p612_p4)  ;;  %v414_v54 = vld [vmem:[#allocation6 + $0x68] sm:$0xff] (!%p612_p4)  ;;  %v415_v56 = vld [vmem:[#allocation6 + $0x70] sm:$0xff] (!%p612_p4) }
  0x69   : > { %731 = vmatpush3.bf16.msra.mxu0 %v730_v11  ;;  %v763_v52 = vpack.c.bf16 (!%p612_p4), %v412_v51, %v411_v50  ;;  %v766_v55 = vpack.c.bf16 (!%p612_p4), %v414_v54, %v413_v53  ;;  %v416_v57 = vld [vmem:[#allocation6 + $0x78] sm:$0xff] (!%p612_p4) }
  0x6a   : > { %732 = vmatprep.subr.bf16.mxu0 %v1000_v4  ;;  %v769_v58 = vpack.c.bf16 (!%p612_p4), %v416_v57, %v415_v56  ;;  %v613_v60 = vld [vmem:[%s1269_s4] ss:$0 sm:$0xff] (!%p612_p4) }
  0x6d   : > { %734 = vmatpush3.bf16.msra.mxu0 %v733_v14 }
  0x6e   : > { %735 = vmatprep.subr.bf16.mxu0 %v1000_v4 }
  0x71   : > { %737 = vmatpush3.bf16.msra.mxu0 %v736_v17 }
  0x72   : > { %738 = vmatprep.subr.bf16.mxu0 %v1000_v4 }
  0x75   : > { %740 = vmatpush3.bf16.msra.mxu0 %v739_v20 }
  0x76   : > { %741 = vmatprep.subr.bf16.mxu0 %v1000_v4 }
  0x79   : > { %743 = vmatpush3.bf16.msra.mxu0 %v742_v23 }
  0x7a   : > { %744 = vmatprep.subr.bf16.mxu0 %v1000_v4 }
  0x7d   : > { %746 = vmatpush3.bf16.msra.mxu0 %v745_v26 }
  0x7e   : > { %747 = vmatprep.subr.bf16.mxu0 (!%p612_p4), %v1003_v36 }
  0x80   : > { %686 = vmatmul.mubr.f32.vlgmr.msra.gmra.mrb[0].mxu0 %v300_v27 }
  0x81   : > { %720 = vmatprep.mubr.msk.f32.mxu0 (!%p612_p4), %vm1004_vm1, %v1005_v39  ;;  %749 = vmatpush3.bf16.msra.mxu0 (!%p612_p4), %v748_v37 }
  0x82   : > { %750 = vmatprep.subr.bf16.mxu0 (!%p612_p4), %v1003_v36 }
  0x85   : > { %752 = vmatpush3.bf16.msra.mxu0 (!%p612_p4), %v751_v40 }
  0x86   : > { %753 = vmatprep.subr.bf16.mxu0 (!%p612_p4), %v1003_v36 }
  0x89   : > { %755 = vmatpush3.bf16.msra.mxu0 (!%p612_p4), %v754_v43 }
  0x8a   : > { %756 = vmatprep.subr.bf16.mxu0 (!%p612_p4), %v1003_v36 }
  0x8d   : > { %758 = vmatpush3.bf16.msra.mxu0 (!%p612_p4), %v757_v46 }
  0x8e   : > { %759 = vmatprep.subr.bf16.mxu0 (!%p612_p4), %v1003_v36 }
  0x91   : > { %761 = vmatpush3.bf16.msra.mxu0 (!%p612_p4), %v760_v49 }
  0x92   : > { %762 = vmatprep.subr.bf16.mxu0 (!%p612_p4), %v1003_v36 }
  0x95   : > { %764 = vmatpush3.bf16.msra.mxu0 (!%p612_p4), %v763_v52 }
  0x96   : > { %765 = vmatprep.subr.bf16.mxu0 (!%p612_p4), %v1003_v36 }
  0x99   : > { %767 = vmatpush3.bf16.msra.mxu0 (!%p612_p4), %v766_v55 }
  0x9a   : > { %768 = vmatprep.subr.bf16.mxu0 (!%p612_p4), %v1003_v36 }
  0x9d   : > { %770 = vmatpush3.bf16.msra.mxu0 (!%p612_p4), %v769_v58 }
 0x152   : > { %399 = sbr.rel (%p612_p4) target bundleno = 567 (0x237), region = 56 }
 0x153   : > { %v390_v29 = vpop.f32.mrb[0].mxu0 }
 0x154   : > { %v391_v30 = vadd.f32 %v611_v28, %v390_v29  ;;  %v687_v31 = vpop.f32.mrb[1].mxu0 }
 0x156   : > { %v394_v32 = vmax.f32 %v391_v30, 0.0 }
 0x158   : > { %395 = vst [vmem:[#allocation2] sm:$0xff] %v394_v32 }
 0x15f   : > { %v400_v59 = vld [vmem:[#allocation2] sm:$0xff] }
 0x160   : > { %721 = vmatmul.mubr.f32.vlgmr.msra.gmra.mrb[0].mxu0 %v400_v59 }
 0x233   : > { %v490_v61 = vpop.f32.mrb[0].mxu0 }
 0x234   : > { %v491_v62 = vadd.f32 %v613_v60, %v490_v61  ;;  %v722_v63 = vpop.f32.mrb[1].mxu0 }
 0x236   : > { %494 = vst [vmem:[#allocation8] sm:$0xff] %v491_v62 }
 0x237 PF: > { %p1221_p5 = scmp.eq.s32.totalorder %s599_s24, 1  ;;  %s1006_s13 = smov [#allocation8]  }
 0x238   : > { %s504_s7 = sshll.u32 %s1006_s13, 4  ;;  %s505_s7 = int_to_ptr.vmem [resolvable:$true] %s504_s7 }
 0x239   : > { %s910_s30 = scalar_lea.vmem %s505_s7, 128  ;;  %p917_p11 = scmp.lt.s32.totalorder %s505_s7, %s505_s7 }
 0x23a   : > { %p911_p8 = scmp.ne.s32.totalorder %s505_s7, %s910_s30  ;;  %p918_p13 = scmp.lt.s32.totalorder %s910_s30, %s910_s30 }
 0x23c   : > { %p912_p9 = pnand %p911_p8, %p1221_p5  ;;  %p919_p2 = por %p918_p13, %p917_p11 }
 0x23e   : > { %p913_p10 = pneg %p912_p9 }
 0x240   : > { %p920_p3 = pnand %p919_p2, %p913_p10 }
 0x242   : > { %923 = shalt.err (!%p920_p3)
}
 0x243   : > { %s924_s24 = scalar_lea.hbm %s1270_s5, 128 }
 0x244   : > { %p925_p12 = scmp.ne.s32.totalorder %s1270_s5, %s924_s24  ;;  %p930_p7 = scmp.lt.u32.totalorder %s924_s24, %s1270_s5 }
 0x246   : > { %p926_p0 = pnand %p925_p12, %p1221_p5 }
 0x248   : > { %p927_p6 = pneg %p926_p0 }
 0x24a   : > { %p932_p1 = pnand %p930_p7, %p927_p6 }
 0x24c   : > { %935 = shalt.err (!%p932_p1)
}
 0x24d   : > { %778 = dma.vmem_to_hbm [thread:$0]  (%p1221_p5), %s505_s7, 128, %s1270_s5, [#allocation5]  }
 0x24e   : > { %969 = dma.done.wait (%p1221_p5), [#allocation5], 128  }
 0x24f   : > { %971 = vsyncadd (%p1221_p5), [#allocation5], 4294967168 }
 0x250 PF: > { %s20_s23 = sadd.s32 1, %s994_s23   ;;  %s1284_s18 = smov %s978_s19 }
 0x251   : > { %p17_p4 = scmp.ge.s32.totalorder %s20_s23, 4   ;;  %s1285_s19 = smov %s982_s20 }
 0x252   : > { %s1286_s20 = smov %s1125_s10  ;;  %s1287_s21 = smov %s990_s22 }
 0x253   : > { %s1288_s22 = smov %s1290_s6  ;;  %19 = sbr.rel (!%p17_p4) target bundleno = 6 (0x6), region = 96 }
 0x25a   :  { %517 = vsyncpa [#allocation4], 1 }
 0x25b   :  { %519 = vsyncpa [#allocation4 + $0x1], 1 }
 0x25c   :  { %520 = vsyncpa [#allocation7], 1 }
 0x25d   :  { %521 = vsyncpa [#allocation5], 1 }
 0x25e   :  { %523 = vsyncpa [#allocation5 + $0x1], 1 }

</bundles_post_ra>
